<compile_context>
chip_gen: v6e
topology: v6e:2x2x1
jax: 0.10.0
libtpu: 0.0.40
codegen_flags: <defaults>
</compile_context>

<pallas_src>
import jax
import jax.numpy as jnp
from jax.experimental import pallas as pl
from jax.experimental.pallas import tpu as pltpu


_INV_SQRT2 = 0.7071067811865476


def _erf(x):
    """Abramowitz & Stegun 7.1.26 rational erf approximation (|err| <= 1.5e-7).

    Only Mosaic-safe elementwise primitives (mul/add/where/exp), preserving
    torch's exact-GELU (erf) semantics.
    """
    a1, a2, a3, a4, a5 = (0.254829592, -0.284496736, 1.421413741,
                          -1.453152027, 1.061405429)
    p = 0.3275911
    sgn = jnp.where(x >= 0.0, 1.0, -1.0)
    z = jnp.abs(x)
    # Exact divide on purpose: approx reciprocal (~2^-12 rel) pushes the total
    # error too close to the 1e-4 validation tolerance.
    t = 1.0 / (1.0 + p * z)
    poly = ((((a5 * t + a4) * t + a3) * t + a2) * t + a1) * t
    return sgn * (1.0 - poly * jnp.exp(-z * z))


def _gelu_exact(x):
    """GELU(x) = 0.5 * x * (1 + erf(x / sqrt(2)))  (torch nn.GELU default)."""
    return 0.5 * x * (1.0 + _erf(x * _INV_SQRT2))


def cross_token_mixer_kernel(x_ref, w1t_ref, b1_ref, w2t_ref, b2_ref, o_ref):
    """One grid step = (Bt batch elements, one lane-dense D tile).

    x_ref   : (Bt, n_in, td)  VMEM
    w1t_ref : (n_out, n_in)   VMEM   (= W1^T, grid-invariant -> stays resident)
    b1_ref  : (n_out, 1)      VMEM
    w2t_ref : (n_in, n_out)   VMEM   (= W2^T, grid-invariant)
    b2_ref  : (n_in, 1)       VMEM
    o_ref   : (Bt, n_in, td)  VMEM
    """
    w1t = w1t_ref[...]
    b1 = b1_ref[...]
    w2t = w2t_ref[...]
    b2 = b2_ref[...]

    bt = x_ref.shape[0]
    # Short static loop (Bt <= 8): weights are reused across batch elements,
    # amortizing per-step overhead with no extra weight traffic.
    for b in range(bt):
        x = x_ref[b]                                          # (n_in, td)
        # Expansion: (n_out, n_in) @ (n_in, td) -> (n_out, td), f32 accumulate.
        h = jnp.dot(w1t, x, preferred_element_type=jnp.float32)
        h = _gelu_exact(h + b1)                               # f32 elementwise
        # Contraction back: (n_in, n_out) @ (n_out, td) -> (n_in, td).
        y = jnp.dot(w2t, h.astype(w2t.dtype),
                    preferred_element_type=jnp.float32)
        o_ref[b] = (y + b2).astype(o_ref.dtype)


def _physical_vmem_bytes():
    try:
        return int(pltpu.get_tpu_info().vmem_capacity_bytes)
    except Exception:
        return 64 << 20   # v7x per-TC VMEM: most conservative across generations


def _choose_tiling(B, n_in, n_out, D, itemsize):
    """Pick (td, Bt, vmem_limit_bytes) from the VMEM budget, not a fixed ladder."""
    phys = _physical_vmem_bytes()
    vmem_limit = int(phys * 0.75)      # headroom for compiler-internal scratch
    budget = int(vmem_limit * 0.80)    # what the tiles + weights may consume

    # Grid-invariant weights/biases are still double-buffered by the pipeliner.
    weight_bytes = 2 * (2 * n_in * n_out + n_in + n_out) * itemsize

    # (8,128) rule: td must be a multiple of 128 dividing D, or the full D.
    if D % 128 == 0:
        td_cands = sorted((d for d in range(128, D + 1, 128) if D % d == 0),
                          reverse=True)
    else:
        td_cands = [D]

    max_bt = 8   # keep the unrolled in-kernel batch loop short

    for td in td_cands:
        h_bytes = 4 * n_out * td * 4            # f32 h + GELU temporaries (one live)
        per_b_io = 4 * n_in * td * itemsize     # x + out tiles, double-buffered
        fixed = weight_bytes + h_bytes
        if fixed + per_b_io > budget:
            continue
        bt_cap = min(max_bt, (budget - fixed) // per_b_io, B)
        # Keep >= 2 grid steps so both v7x TensorCores get work (no-op on 1-TC chips).
        if D // td == 1 and B >= 2:
            bt_cap = min(bt_cap, B // 2)
        bt_cap = max(int(bt_cap), 1)
        bt = max(d for d in range(1, bt_cap + 1) if B % d == 0)
        return td, bt, vmem_limit

    # Nothing fit the budget (e.g. huge non-128-multiple D): smallest tile, Bt=1.
    return td_cands[-1], 1, vmem_limit


def cross_token_mixer(x, w1, b1, w2, b2):
    """x: (B, n_in, D); w1: (n_in, n_out); b1: (n_out,); w2: (n_out, n_in); b2: (n_in,)."""
    B, n_in, D = x.shape
    n_out = w1.shape[1]
    assert w1.shape == (n_in, n_out) and w2.shape == (n_out, n_in)
    assert b1.shape == (n_out,) and b2.shape == (n_in,)

    itemsize = jnp.dtype(x.dtype).itemsize
    td, bt, vmem_limit = _choose_tiling(B, n_in, n_out, D, itemsize)
    grid = (B // bt, D // td)

    # One-off layout plumbing (outside the kernel): transposed weights give
    # standard MXU contractions in-kernel; 2-D column biases broadcast along
    # the lane (D) axis with no in-kernel relayout.
    w1t = w1.T                      # (n_out, n_in)
    w2t = w2.T                      # (n_in, n_out)
    b1c = b1.reshape(n_out, 1)
    b2c = b2.reshape(n_in, 1)

    flops = 4 * B * n_in * n_out * D
    transcendentals = B * n_out * D
    bytes_accessed = (2 * B * n_in * D + 2 * n_in * n_out + n_in + n_out) * itemsize

    return pl.pallas_call(
        cross_token_mixer_kernel,
        out_shape=jax.ShapeDtypeStruct((B, n_in, D), x.dtype),
        grid_spec=pltpu.PrefetchScalarGridSpec(
            num_scalar_prefetch=0,
            grid=grid,
            in_specs=[
                pl.BlockSpec((bt, n_in, td), lambda b, dt: (b, 0, dt)),   # x tile
                pl.BlockSpec((n_out, n_in), lambda b, dt: (0, 0)),        # W1^T
                pl.BlockSpec((n_out, 1), lambda b, dt: (0, 0)),           # b1
                pl.BlockSpec((n_in, n_out), lambda b, dt: (0, 0)),        # W2^T
                pl.BlockSpec((n_in, 1), lambda b, dt: (0, 0)),            # b2
            ],
            out_specs=pl.BlockSpec((bt, n_in, td), lambda b, dt: (b, 0, dt)),
        ),
        compiler_params=pltpu.CompilerParams(
            dimension_semantics=("parallel", "parallel"),
            vmem_limit_bytes=vmem_limit),
        cost_estimate=pl.CostEstimate(
            flops=flops,
            transcendentals=transcendentals,
            bytes_accessed=bytes_accessed),
    )(x, w1t, b1c, w2t, b2c)


def cross_token_mixer_ref(x, w1, b1, w2, b2):
    """Pure-JAX reference mirroring the PyTorch forward (EinMix -> GELU -> EinMix)."""
    h = jnp.einsum('bkd,km->bmd', x, w1) + b1[None, :, None]
    h = jax.nn.gelu(h, approximate=False)          # torch nn.GELU default (erf)
    return jnp.einsum('bmd,mn->bnd', h, w2) + b2[None, :, None]


def _run_case(key, B, SEQ, D, exp_factor=0.5):
    n_out = int(exp_factor * SEQ)
    kx, kw1, kb1, kw2, kb2 = jax.random.split(key, 5)
    x = jax.random.normal(kx, (B, SEQ, D), dtype=jnp.float32)
    w1 = jax.random.normal(kw1, (SEQ, n_out), dtype=jnp.float32) * 0.2
    b1 = jax.random.normal(kb1, (n_out,), dtype=jnp.float32) * 0.1
    w2 = jax.random.normal(kw2, (n_out, SEQ), dtype=jnp.float32) * 0.2
    b2 = jax.random.normal(kb2, (SEQ,), dtype=jnp.float32) * 0.1

    out = jax.block_until_ready(cross_token_mixer(x, w1, b1, w2, b2))
    ref = cross_token_mixer_ref(x, w1, b1, w2, b2)
    assert out.shape == (B, SEQ, D)
    err = jnp.max(jnp.abs(out - ref))
    assert jnp.allclose(out, ref, rtol=1e-4, atol=1e-4), f"max err {err}"


if __name__ == "__main__":
    # Small configs consistent with the module: seq_len=8, expansion_factor=0.5
    # (n_out=4).  self.norm is constructed but unused in forward(), so omitted.
    key = jax.random.PRNGKey(0)
    k1, k2 = jax.random.split(key)
    _run_case(k1, B=2, SEQ=8, D=32)     # small demo shape (non-128 D path)
    _run_case(k2, B=4, SEQ=8, D=256)    # lane-dense path, exercises Bt>1 blocking
    print("KERNEL_OK")
</pallas_src>

<mosaic_0001>
module attributes {stable_mosaic.version = 11 : i64} {
  func.func @cross_token_mixer_kernel(%arg0: i32, %arg1: i32, %arg2: memref<1x8x32xf32, #tpu.memory_space<vmem>>, %arg3: memref<4x8xf32, #tpu.memory_space<vmem>>, %arg4: memref<4x1xf32, #tpu.memory_space<vmem>>, %arg5: memref<8x4xf32, #tpu.memory_space<vmem>>, %arg6: memref<8x1xf32, #tpu.memory_space<vmem>>, %arg7: memref<1x8x32xf32, #tpu.memory_space<vmem>>) attributes {dimension_semantics = [#tpu.dimension_semantics<parallel>, #tpu.dimension_semantics<parallel>], iteration_bounds = array<i64: 2, 1>, scalar_prefetch = 0 : i64, scratch_operands = 0 : i64, tpu.core_type = #tpu.core_type<tc>, window_params = [{transform_indices = @transform_0, window_bounds = array<i64: 1, 8, 32>}, {pipeline_mode = #tpu.pipeline_mode<synchronous>, transform_indices = @transform_1, window_bounds = array<i64: 4, 8>}, {pipeline_mode = #tpu.pipeline_mode<synchronous>, transform_indices = @transform_2, window_bounds = array<i64: 4, 1>}, {pipeline_mode = #tpu.pipeline_mode<synchronous>, transform_indices = @transform_3, window_bounds = array<i64: 8, 4>}, {pipeline_mode = #tpu.pipeline_mode<synchronous>, transform_indices = @transform_4, window_bounds = array<i64: 8, 1>}, {transform_indices = @transform_5, window_bounds = array<i64: 1, 8, 32>}]} {
    %c0 = arith.constant 0 : index
    %c0_0 = arith.constant 0 : index
    %0 = vector.load %arg3[%c0, %c0_0] : memref<4x8xf32, #tpu.memory_space<vmem>>, vector<4x8xf32>
    %c0_1 = arith.constant 0 : index
    %c0_2 = arith.constant 0 : index
    %1 = vector.load %arg4[%c0_1, %c0_2] : memref<4x1xf32, #tpu.memory_space<vmem>>, vector<4x1xf32>
    %c0_3 = arith.constant 0 : index
    %c0_4 = arith.constant 0 : index
    %2 = vector.load %arg5[%c0_3, %c0_4] : memref<8x4xf32, #tpu.memory_space<vmem>>, vector<8x4xf32>
    %c0_5 = arith.constant 0 : index
    %c0_6 = arith.constant 0 : index
    %3 = vector.load %arg6[%c0_5, %c0_6] : memref<8x1xf32, #tpu.memory_space<vmem>>, vector<8x1xf32>
    %c0_7 = arith.constant 0 : index
    %c0_8 = arith.constant 0 : index
    %c0_9 = arith.constant 0 : index
    %4 = vector.load %arg2[%c0_7, %c0_8, %c0_9] : memref<1x8x32xf32, #tpu.memory_space<vmem>>, vector<1x8x32xf32>
    %5 = vector.shape_cast %4 : vector<1x8x32xf32> to vector<8x32xf32>
    %cst = arith.constant dense<0.000000e+00> : vector<4x32xf32>
    %6 = tpu.matmul %0, %5, %cst {dimension_numbers = #tpu.dot_dimension_numbers<[1], [0], [0], [1], [0, 0, 1, 1], [], []>} : vector<4x8xf32>, vector<8x32xf32>, vector<4x32xf32> -> vector<4x32xf32>
    %7 = vector.broadcast %1 : vector<4x1xf32> to vector<4x32xf32>
    %8 = arith.addf %6, %7 : vector<4x32xf32>
    %cst_10 = arith.constant 5.000000e-01 : f32
    %9 = vector.broadcast %cst_10 : f32 to vector<4x32xf32>
    %10 = arith.mulf %9, %8 : vector<4x32xf32>
    %cst_11 = arith.constant 0.707106769 : f32
    %11 = vector.broadcast %cst_11 : f32 to vector<4x32xf32>
    %12 = arith.mulf %8, %11 : vector<4x32xf32>
    %cst_12 = arith.constant 0.000000e+00 : f32
    %13 = vector.broadcast %cst_12 : f32 to vector<4x32xf32>
    %14 = arith.cmpf oge, %12, %13 : vector<4x32xf32>
    %cst_13 = arith.constant 1.000000e+00 : f32
    %cst_14 = arith.constant -1.000000e+00 : f32
    %15 = vector.broadcast %cst_13 : f32 to vector<4x32xf32>
    %16 = vector.broadcast %cst_14 : f32 to vector<4x32xf32>
    %17 = arith.select %14, %15, %16 : vector<4x32xi1>, vector<4x32xf32>
    %18 = math.absf %12 : vector<4x32xf32>
    %cst_15 = arith.constant 0.327591091 : f32
    %19 = vector.broadcast %cst_15 : f32 to vector<4x32xf32>
    %20 = arith.mulf %19, %18 : vector<4x32xf32>
    %cst_16 = arith.constant 1.000000e+00 : f32
    %21 = vector.broadcast %cst_16 : f32 to vector<4x32xf32>
    %22 = arith.addf %21, %20 : vector<4x32xf32>
    %cst_17 = arith.constant 1.000000e+00 : f32
    %23 = vector.broadcast %cst_17 : f32 to vector<4x32xf32>
    %24 = arith.divf %23, %22 : vector<4x32xf32>
    %cst_18 = arith.constant 1.06140542 : f32
    %25 = vector.broadcast %cst_18 : f32 to vector<4x32xf32>
    %26 = arith.mulf %25, %24 : vector<4x32xf32>
    %cst_19 = arith.constant -1.45315206 : f32
    %27 = vector.broadcast %cst_19 : f32 to vector<4x32xf32>
    %28 = arith.addf %26, %27 : vector<4x32xf32>
    %29 = arith.mulf %28, %24 : vector<4x32xf32>
    %cst_20 = arith.constant 1.42141378 : f32
    %30 = vector.broadcast %cst_20 : f32 to vector<4x32xf32>
    %31 = arith.addf %29, %30 : vector<4x32xf32>
    %32 = arith.mulf %31, %24 : vector<4x32xf32>
    %cst_21 = arith.constant -0.284496725 : f32
    %33 = vector.broadcast %cst_21 : f32 to vector<4x32xf32>
    %34 = arith.addf %32, %33 : vector<4x32xf32>
    %35 = arith.mulf %34, %24 : vector<4x32xf32>
    %cst_22 = arith.constant 0.254829586 : f32
    %36 = vector.broadcast %cst_22 : f32 to vector<4x32xf32>
    %37 = arith.addf %35, %36 : vector<4x32xf32>
    %38 = arith.mulf %37, %24 : vector<4x32xf32>
    %cst_23 = arith.constant 0.000000e+00 : f32
    %39 = vector.broadcast %cst_23 : f32 to vector<4x32xf32>
    %40 = arith.subf %39, %18 : vector<4x32xf32>
    %41 = arith.mulf %40, %18 : vector<4x32xf32>
    %42 = math.exp %41 : vector<4x32xf32>
    %43 = arith.mulf %38, %42 : vector<4x32xf32>
    %cst_24 = arith.constant 1.000000e+00 : f32
    %44 = vector.broadcast %cst_24 : f32 to vector<4x32xf32>
    %45 = arith.subf %44, %43 : vector<4x32xf32>
    %46 = arith.mulf %17, %45 : vector<4x32xf32>
    %cst_25 = arith.constant 1.000000e+00 : f32
    %47 = vector.broadcast %cst_25 : f32 to vector<4x32xf32>
    %48 = arith.addf %47, %46 : vector<4x32xf32>
    %49 = arith.mulf %10, %48 : vector<4x32xf32>
    %cst_26 = arith.constant dense<0.000000e+00> : vector<8x32xf32>
    %50 = tpu.matmul %2, %49, %cst_26 {dimension_numbers = #tpu.dot_dimension_numbers<[1], [0], [0], [1], [0, 0, 1, 1], [], []>} : vector<8x4xf32>, vector<4x32xf32>, vector<8x32xf32> -> vector<8x32xf32>
    %51 = vector.broadcast %3 : vector<8x1xf32> to vector<8x32xf32>
    %52 = arith.addf %50, %51 : vector<8x32xf32>
    %c0_27 = arith.constant 0 : index
    %c0_28 = arith.constant 0 : index
    %c0_29 = arith.constant 0 : index
    %53 = vector.load %arg7[%c0_27, %c0_28, %c0_29] : memref<1x8x32xf32, #tpu.memory_space<vmem>>, vector<1x8x32xf32>
    %54 = vector.shape_cast %53 : vector<1x8x32xf32> to vector<8x32xf32>
    %55 = vector.shape_cast %52 : vector<8x32xf32> to vector<1x8x32xf32>
    tpu.vector_store %arg7[%c0_27, %c0_28, %c0_29], %55 {strides = array<i32>} : memref<1x8x32xf32, #tpu.memory_space<vmem>>, vector<1x8x32xf32>,
    return
  }
  func.func @transform_0(%arg0: i32, %arg1: i32) -> (i32, i32, i32) {
    %c0_i32 = arith.constant 0 : i32
    %c0_i32_0 = arith.constant 0 : i32
    return %arg0, %c0_i32, %arg1 : i32, i32, i32
  }
  func.func @transform_1(%arg0: i32, %arg1: i32) -> (i32, i32) {
    %c0_i32 = arith.constant 0 : i32
    %c0_i32_0 = arith.constant 0 : i32
    %c0_i32_1 = arith.constant 0 : i32
    return %c0_i32, %c0_i32_0 : i32, i32
  }
  func.func @transform_2(%arg0: i32, %arg1: i32) -> (i32, i32) {
    %c0_i32 = arith.constant 0 : i32
    %c0_i32_0 = arith.constant 0 : i32
    %c0_i32_1 = arith.constant 0 : i32
    return %c0_i32, %c0_i32_0 : i32, i32
  }
  func.func @transform_3(%arg0: i32, %arg1: i32) -> (i32, i32) {
    %c0_i32 = arith.constant 0 : i32
    %c0_i32_0 = arith.constant 0 : i32
    %c0_i32_1 = arith.constant 0 : i32
    return %c0_i32, %c0_i32_0 : i32, i32
  }
  func.func @transform_4(%arg0: i32, %arg1: i32) -> (i32, i32) {
    %c0_i32 = arith.constant 0 : i32
    %c0_i32_0 = arith.constant 0 : i32
    %c0_i32_1 = arith.constant 0 : i32
    return %c0_i32, %c0_i32_0 : i32, i32
  }
  func.func @transform_5(%arg0: i32, %arg1: i32) -> (i32, i32, i32) {
    %c0_i32 = arith.constant 0 : i32
    %c0_i32_0 = arith.constant 0 : i32
    return %arg0, %c0_i32, %arg1 : i32, i32, i32
  }
}

</mosaic_0001>

<bundles_post_ra>
// kernel: tpu_custom_call.1
= control target key start
LH: loop header
LB: loop body
LE: loop exit
PB: predicated region body
PF: predicated region fallthrough
CT: control target
= control target key end

     0   :  { %10 = vsyncpa [#allocation3], 0  ;;  %s849_s0 = inlined_call_operand.vmem [shape: f32[2,8,32], index: 0, kind: input, shape index: {}]   ;;  %s850_s1 = inlined_call_operand.vmem [shape: f32[4,8], index: 1, kind: input, shape index: {}]   ;;  %s851_s2 = inlined_call_operand.vmem [shape: f32[4,1], index: 2, kind: input, shape index: {}]   ;;  %s852_s3 = inlined_call_operand.vmem [shape: f32[8,4], index: 3, kind: input, shape index: {}]   ;;  %s853_s4 = inlined_call_operand.vmem [shape: f32[8,1], index: 4, kind: input, shape index: {}]   ;;  %s854_s5 = inlined_call_operand.hbm [shape: f32[2,8,32], index: 5, kind: output, shape index: {}]  }
   0x1   :  { %12 = vsyncpa [#allocation3 + $0x1], 0  ;;  %s732_s18 = smov 0   ;;  %s734_s19 = smov 0  }
   0x2   :  { %s736_s20 = smov 0   ;;  %s738_s21 = smov 0  }
   0x3   :  { %s740_s22 = smov 0   ;;  %s742_s23 = smov 0  }
   0x4 LB: > { %s527_s24 = sadd.s32 4294967295, %s695_s23   ;;  %s528_s25 = sadd.s32 4294967294, %s695_s23   ;;  %s695_s23 = sphi %s742_s23, %s18_s23   ;;  %s691_s22 = sphi %s740_s22, %s861_s22   ;;  %s687_s21 = sphi %s738_s21, %s860_s21   ;;  %s683_s20 = sphi %s736_s20, %s859_s20   ;;  %s679_s19 = sphi %s734_s19, %s858_s19   ;;  %s675_s18 = sphi %s732_s18, %s857_s18  }
   0x5   : > { %s30_s26 = sadd.s32 1, %s691_s22  ;;  %s151_s27 = sadd.s32 1, %s683_s20 }
   0x6   : > { %p32_p0 = scmp.ge.s32.totalorder %s30_s26, 2  ;;  %p161_p1 = scmp.ne.s32.totalorder %s683_s20, %s679_s19 }
   0x7   : > { %p162_p2 = scmp.eq.s32.totalorder %s527_s24, 1  ;;  %p167_p3 = scmp.ne.s32.totalorder %s679_s19, %s675_s18 }
   0x8   : > { %s863_s26 = smov (%p32_p0, %s30_s26), 0  ;;  %p168_p5 = scmp.eq.s32.totalorder %s528_s25, 1 }
   0x9   : > { %p772_p4 = por %p162_p2, %p161_p1  ;;  %s146_s29 = ssub.s32 %s691_s22, %s863_s26 }
   0xa   : > { %p531_p6 = scmp.ge.s32.totalorder %s695_s23, 1  ;;  %p149_p7 = scmp.eq.s32.totalorder %s146_s29, 0 }
   0xb   : > { %p779_p8 = por %p168_p5, %p167_p3  ;;  %p208_p9 = scmp.lt.s32.totalorder %s695_s23, 3 }
   0xc   : > { %s785_s6 = scalar_select %p149_p7, %s683_s20, %s151_s27  }
   0xd   : > { %p209_p10 = pnand %p531_p6, %p208_p9 }
   0xe   : > { %p238_p11 = scmp.lt.s32.totalorder (!%p209_p10), %s687_s21, 1  ;;  %s235_s27 = sand.u32 (!%p209_p10), 1, %s679_s19  }
   0xf   : > { %212 = sbr.rel (%p209_p10) target bundleno = 480 (0x1e0), region = 40  ;;  %s532_s29 = sshll.u32 (!%p209_p10), %s235_s27, 3 }
  0x10   : > { %s538_s7 = sshll.u32 (!%p209_p10), %s687_s21, 7  ;;  %s237_s8 = scalar_lea.vmem (!%p209_p10), [#allocation2], %s532_s29 }
  0x11   : > { %s809_s12 = scalar_lea.hbm (!%p209_p10), %s854_s5, %s538_s7  ;;  %s442_s13 = scalar_lea.sflag (!%p209_p10), [#allocation3], %s235_s27 }
  0x14   : > { %v697_v0 = vmov 0.0   ;;  %vm698_vm0 = vmmov 0   ;;  %v246_v1 = vld [vmem:[%s851_s2] sm:$0xf]  ;;  %s239_s9 = scalar_select %p238_p11, %s687_s21, 1  ;;  %v699_v2 = vmov 0  }
  0x15   : > { %545 = vmatprep.subr.mxu0 %v697_v0  ;;  %547 = vmatprep.mubr.msk.f32.mxu0 %vm698_vm0, %v697_v0  ;;  %v248_v3 = vld [vmem:[%s853_s4] sm:$0xff]  ;;  %vm255_vm1 = vcmask 64512   ;;  %v700_v30 = vmov -1.0   ;;  %vm365_vm3 = vcmask 1043456   ;;  %vm361_vm4 = vcmask 31744   ;;  %s701_s21 = smov [#allocation2]  }
  0x16   : > { %614 = vset.pattern.permute.xlu0 %v699_v2  ;;  %550 = vmatprep.subr.mxu1 %v697_v0  ;;  %s533_s10 = sshll.u32 %s239_s9, 3  ;;  %v245_v4 = vld [vmem:[%s850_s1] sm:$0xf]  ;;  %s456_s9 = sshll.u32 %s237_s8, 4  ;;  %vm439_vm5 = vcmask 261120   ;;  %s457_s9 = int_to_ptr.vmem [resolvable:$true] %s456_s9 }
  0x17   : > { %252 = vperm.xlu0 %614, %v246_v1   ;;  %552 = vmatprep.mubr.msk.f32.mxu1 %vm698_vm0, %v697_v0  ;;  %s244_s15 = scalar_lea.vmem %s849_s0, %s533_s10  ;;  %v247_v36 = vld [vmem:[%s852_s3] sm:$0xff]  ;;  %s619_s14 = scalar_lea.vmem %s457_s9, 128 }
  0x18   : > { %v249_v5 = vld [vmem:[%s244_s15] sm:$0xff]  ;;  %p620_p12 = scmp.ne.s32.totalorder %s457_s9, %s619_s14  ;;  %s623_s15 = sshll.u32 %s701_s21, 4  ;;  %s624_s15 = int_to_ptr.vmem [resolvable:$false] %s623_s15 }
  0x19   : > { %546 = vmatpush3.msra.mxu0 %v249_v5  ;;  %s625_s16 = scalar_lea.vmem %s624_s15, 256  ;;  %p626_p1 = scmp.lt.s32.totalorder %s457_s9, %s624_s15 }
  0x1a   : > { %548 = vmatmul.mubr.msk.f32.vlgmr.msra.gmra.mxu0 %vm255_vm1, %v245_v4  ;;  %p621_p13 = pnand %p620_p12, %p772_p4  ;;  %p627_p2 = scmp.lt.s32.totalorder %s625_s16, %s619_s14 }
  0x1b   : > { %358 = vperm.xlu0 %614, %v248_v3  }
  0x1c   : > { %p622_p0 = pneg %p621_p13  ;;  %p628_p3 = por %p627_p2, %p626_p1 }
  0x1e   : > { %p629_p5 = pnand %p628_p3, %p622_p0 }
  0x92   : > { %v253_v6 = vpop.permute.xlu0 %252 }
  0x96   : > { %v359_v37 = vpop.permute.xlu0 %358 }
  0xda   : > { %v325_v7 = vpop.f32.mrf.mxu0 }
  0xdb   : > { %v326_v8 = vadd.f32 %v325_v7, %v253_v6 }
  0xdc   : > { %v549_v9 = vpop.f32.mrf.mxu0 }
  0xdd   : > { %v330_v10 = vmul.f32 0.70710677, %v326_v8  ;;  %v329_v33 = vmul.f32 0.5, %v326_v8 }
  0xdf   : > { %v333_v11 = vand.u32 2147483647, %v330_v10  ;;  %vm331_vm2 = vcmp.ge.f32.partialorder %v330_v10, 0.0 }
  0xe0   : > { %v332_v31 = vsel %vm331_vm2, 1.0, %v700_v30 }
  0xe1   : > { %v334_v12 = vmul.f32 0.3275911, %v333_v11  ;;  %v347_v14 = vsub.f32 0.0, %v333_v11 }
  0xe3   : > { %v335_v13 = vadd.f32 1.0, %v334_v12  ;;  %v348_v15 = vmul.f32 %v347_v14, %v333_v11 }
  0xe5   : > { %615 = vrcp.f32 %v335_v13  ;;  %v349_v17 = vmul.f32 1.442695, %v348_v15 }
  0xe7   : > { %617 = vpow2.f32 %v349_v17 }
  0xf2   : > { %v616_v16 = vpop.eup %615 }
  0xf3   : > { %v338_v18 = vmul.f32 1.0614054, %v616_v16 }
  0xf4   : > { %v618_v27 = vpop.eup %617 }
  0xf5   : > { %v339_v19 = vadd.f32 -1.4531521, %v338_v18 }
  0xf7   : > { %v340_v20 = vmul.f32 %v616_v16, %v339_v19 }
  0xf9   : > { %v341_v21 = vadd.f32 1.4214138, %v340_v20 }
  0xfb   : > { %v342_v22 = vmul.f32 %v616_v16, %v341_v21 }
  0xfd   : > { %v343_v23 = vadd.f32 -0.28449672, %v342_v22 }
  0xff   : > { %v344_v24 = vmul.f32 %v616_v16, %v343_v23 }
 0x101   : > { %v345_v25 = vadd.f32 0.2548296, %v344_v24 }
 0x103   : > { %v346_v26 = vmul.f32 %v616_v16, %v345_v25 }
 0x105   : > { %v351_v28 = vmul.f32 %v618_v27, %v346_v26 }
 0x107   : > { %v352_v29 = vsub.f32 1.0, %v351_v28 }
 0x109   : > { %v353_v32 = vmul.f32 %v352_v29, %v332_v31 }
 0x10b   : > { %v354_v34 = vadd.f32 1.0, %v353_v32 }
 0x10d   : > { %v355_v35 = vmul.f32 %v354_v34, %v329_v33 }
 0x10f   : > { %551 = vmatpush3.msk.msra.mxu1 %vm365_vm3, %v355_v35 }
 0x110   : > { %553 = vmatmul.mubr.msk.f32.vlgmr.msra.gmra.mxu1 %vm361_vm4, %v247_v36 }
 0x1d0   : > { %v435_v38 = vpop.f32.mrf.mxu1 }
 0x1d1   : > { %v436_v39 = vadd.f32 %v435_v38, %v359_v37 }
 0x1d2   : > { %v554_v40 = vpop.f32.mrf.mxu1 }
 0x1d3   : > { %440 = vst.msk [vmem:[%s237_s8] sm:$0xff] %vm439_vm5, %v436_v39 }
 0x1d4   : > { %632 = shalt.err (!%p629_p5)
}
 0x1d5   : > { %s633_s17 = scalar_lea.hbm %s809_s12, 128  ;;  %s637_s27 = scalar_lea.hbm %s854_s5, 256 }
 0x1d6   : > { %p634_p6 = scmp.ne.s32.totalorder %s809_s12, %s633_s17  ;;  %p638_p10 = scmp.lt.s32.totalorder %s809_s12, %s854_s5 }
 0x1d7   : > { %p639_p11 = scmp.lt.s32.totalorder %s637_s27, %s633_s17 }
 0x1d8   : > { %p635_p7 = pnand %p634_p6, %p772_p4 }
 0x1d9   : > { %p640_p12 = por %p639_p11, %p638_p10 }
 0x1da   : > { %p636_p9 = pneg %p635_p7 }
 0x1dc   : > { %p641_p13 = pnand %p640_p12, %p636_p9 }
 0x1de   : > { %644 = shalt.err (!%p641_p13)
}
 0x1df   : > { %555 = dma.vmem_to_hbm [thread:$0]  (%p772_p4), %s457_s9, 128, %s809_s12, %s442_s13  }
 0x1e0 PF: > { %p561_p0 = scmp.ge.s32.totalorder %s695_s23, 2  ;;  %s468_s8 = sand.u32 1, %s675_s18  }
 0x1e1   : > { %s469_s10 = scalar_lea.sflag [#allocation3], %s468_s8 }
 0x1e2   : > { %p558_p1 = pnand %p561_p0, %p779_p8 }
 0x1e4   : > { %p559_p2 = pneg %p558_p1 }
 0x1e6   : > { %670 = dma.done.wait (%p559_p2), %s469_s10, 128  }
 0x1e7   : > { %672 = vsyncadd (%p559_p2), %s469_s10, 4294967168  ;;  %s18_s23 = sadd.s32 1, %s695_s23   ;;  %s857_s18 = smov %s679_s19 }
 0x1e8   : > { %p15_p3 = scmp.ge.s32.totalorder %s18_s23, 4   ;;  %s858_s19 = smov %s683_s20 }
 0x1e9   : > { %s859_s20 = smov %s785_s6  ;;  %s860_s21 = smov %s691_s22 }
 0x1ea   : > { %s861_s22 = smov %s863_s26  ;;  %17 = sbr.rel (!%p15_p3) target bundleno = 4 (0x4), region = 75 }
 0x1ef   :  { %474 = vsyncpa [#allocation3], 1 }
 0x1f0   :  { %476 = vsyncpa [#allocation3 + $0x1], 1 }

</bundles_post_ra>
